<compile_context>
chip_gen: v6e
topology: v6e:2x2x1
jax: 0.10.0
libtpu: 0.0.40
codegen_flags: <defaults>
</compile_context>

<pallas_src>
import functools

import jax
import jax.numpy as jnp
from jax.experimental import pallas as pl
from jax.experimental.pallas import tpu as pltpu

LANE = 128      # lane width (last-dim granularity)
SUBLANE = 8     # sublane width (second-to-last-dim granularity)


def _round_up(n, m):
    return ((n + m - 1) // m) * m


def dqn_kernel(x_ref, w1_ref, b1_ref, w2_ref, b2_ref, w3_ref, b3_ref, out_ref):
    """Fused forward: relu(x @ W1 + b1) @ W2 + b2 -> relu -> @ W3 + b3.

    x arrives as f32 and is cast to bf16 in-register; weights are bf16; all dots accumulate
    in f32; bias-add and ReLU run in f32 on the VPU.
    """
    x = x_ref[...].astype(jnp.bfloat16)                                     # [tb, in]
    h1 = jnp.dot(x, w1_ref[...], preferred_element_type=jnp.float32) + b1_ref[...]
    h1 = jnp.maximum(h1, 0.0).astype(jnp.bfloat16)                          # [tb, h_p]
    h2 = jnp.dot(h1, w2_ref[...], preferred_element_type=jnp.float32) + b2_ref[...]
    h2 = jnp.maximum(h2, 0.0).astype(jnp.bfloat16)                          # [tb, h_p]
    out_ref[...] = jnp.dot(h2, w3_ref[...], preferred_element_type=jnp.float32) + b3_ref[...]


def init_dqn_params(key, input_size, hidden_size, output_size):
    """nn.Linear-style init (U[-1/sqrt(fan_in), 1/sqrt(fan_in)]); weights stored [in, out], f32."""
    ks = jax.random.split(key, 6)

    def lin(kw, kb, fan_in, fan_out):
        bound = 1.0 / jnp.sqrt(jnp.float32(fan_in))
        w = jax.random.uniform(kw, (fan_in, fan_out), jnp.float32, -bound, bound)
        b = jax.random.uniform(kb, (1, fan_out), jnp.float32, -bound, bound)
        return w, b

    w1, b1 = lin(ks[0], ks[1], input_size, hidden_size)
    w2, b2 = lin(ks[2], ks[3], hidden_size, hidden_size)
    w3, b3 = lin(ks[4], ks[5], hidden_size, output_size)
    return {"w1": w1, "b1": b1, "w2": w2, "b2": b2, "w3": w3, "b3": b3}


def prepare_padded_params(params):
    """Pad ONLY the hidden dim up to a multiple of 128 (affects resident weights only; input
    and output feature dims keep their true sizes so no padded bytes hit HBM per batch tile).
    Weights are cast to bf16, biases stay f32.

    Zero padding is exact: padded hidden lanes get bias 0 -> ReLU(0) = 0 and multiply
    zero weight rows downstream, so real output lanes are unchanged.
    """
    w1, b1 = params["w1"], params["b1"]
    w2, b2 = params["w2"], params["b2"]
    w3, b3 = params["w3"], params["b3"]
    in_size, hidden = w1.shape
    out_size = w3.shape[1]
    h_p = _round_up(hidden, LANE)

    def pad(a, shape):
        return jnp.pad(a, [(0, t - s) for s, t in zip(a.shape, shape)])

    return {
        "w1": pad(w1, (in_size, h_p)).astype(jnp.bfloat16),
        "b1": pad(b1, (1, h_p)),                                  # f32
        "w2": pad(w2, (h_p, h_p)).astype(jnp.bfloat16),
        "b2": pad(b2, (1, h_p)),                                  # f32
        "w3": pad(w3, (h_p, out_size)).astype(jnp.bfloat16),
        "b3": b3,                                                 # f32, true width
    }


@functools.partial(jax.jit, static_argnames=("tb",))
def dqn_forward(x, pparams, *, tb=1024):
    """x: [B, input_size] f32.  pparams: output of prepare_padded_params.
    Returns [B, output_size] f32."""
    w1, b1 = pparams["w1"], pparams["b1"]
    w2, b2 = pparams["w2"], pparams["b2"]
    w3, b3 = pparams["w3"], pparams["b3"]
    B, in_size = x.shape
    h_p = w2.shape[0]
    out_size = w3.shape[1]

    # Batch tiling: pad B only to a sublane multiple, then pick the largest tile <= tb that
    # divides the padded batch (waste per tile < 8 rows instead of up to a full tile).
    b_min = _round_up(B, SUBLANE)
    tile = min(tb, b_min)
    n_tiles = pl.cdiv(b_min, tile)
    tile = _round_up(pl.cdiv(b_min, n_tiles), SUBLANE)
    b_pad = n_tiles * tile
    if b_pad != B:
        x = jnp.pad(x, ((0, b_pad - B), (0, 0)))   # zero rows -> valid, sliced off below

    const = lambda i: (0, 0)      # weights/biases stay resident across the batch grid
    batched = lambda i: (i, 0)    # x / out tiles stream (double-buffered) per grid step

    out = pl.pallas_call(
        dqn_kernel,
        out_shape=jax.ShapeDtypeStruct((b_pad, out_size), jnp.float32),
        grid=(n_tiles,),
        in_specs=[
            pl.BlockSpec((tile, in_size), batched),   # unpadded feature dim (== full array dim)
            pl.BlockSpec((in_size, h_p), const),
            pl.BlockSpec((1, h_p), const),
            pl.BlockSpec((h_p, h_p), const),
            pl.BlockSpec((1, h_p), const),
            pl.BlockSpec((h_p, out_size), const),
            pl.BlockSpec((1, out_size), const),
        ],
        out_specs=pl.BlockSpec((tile, out_size), batched),   # true output width
        compiler_params=pltpu.CompilerParams(
            dimension_semantics=("parallel",),        # megacore sharding of the batch on v7x
            vmem_limit_bytes=32 * 1024 * 1024,        # safe on v7x's 64 MiB physical VMEM
        ),
    )(x, w1, b1, w2, b2, w3, b3)

    return out[:B] if b_pad != B else out


def _reference(x, params):
    h = jnp.maximum(x @ params["w1"] + params["b1"], 0.0)
    h = jnp.maximum(h @ params["w2"] + params["b2"], 0.0)
    return h @ params["w3"] + params["b3"]


if __name__ == "__main__":
    key = jax.random.PRNGKey(0)
    input_size, hidden_size, output_size = 16, 32, 4

    k_x1, k_x2, k_p = jax.random.split(key, 3)
    params = init_dqn_params(k_p, input_size, hidden_size, output_size)
    pparams = prepare_padded_params(params)

    # Small case (module-literal scale): single grid step, batch already sublane-aligned.
    x_small = jax.random.normal(k_x1, (8, input_size), dtype=jnp.float32)
    out_small = jax.block_until_ready(dqn_forward(x_small, pparams))
    assert out_small.shape == (8, output_size)
    assert jnp.allclose(out_small, _reference(x_small, params), atol=5e-2, rtol=5e-2), \
        "small-batch mismatch"   # tolerance covers bf16 weights/activations vs f32 reference

    # Larger batch with a small tile: exercises the batch grid (5 steps), the
    # divide-the-padded-batch tile selection (576 -> 5 x 120) and row padding/slicing.
    x_big = jax.random.normal(k_x2, (576, input_size), dtype=jnp.float32)
    out_big = jax.block_until_ready(dqn_forward(x_big, pparams, tb=128))
    assert out_big.shape == (576, output_size)
    assert jnp.allclose(out_big, _reference(x_big, params), atol=5e-2, rtol=5e-2), \
        "big-batch mismatch"

    print("KERNEL_OK")
</pallas_src>

<mosaic_0001>
module attributes {stable_mosaic.version = 11 : i64} {
  func.func @dqn_kernel(%arg0: i32, %arg1: memref<8x16xf32, #tpu.memory_space<vmem>>, %arg2: memref<16x128xbf16, #tpu.memory_space<vmem>>, %arg3: memref<1x128xf32, #tpu.memory_space<vmem>>, %arg4: memref<128x128xbf16, #tpu.memory_space<vmem>>, %arg5: memref<1x128xf32, #tpu.memory_space<vmem>>, %arg6: memref<128x4xbf16, #tpu.memory_space<vmem>>, %arg7: memref<1x4xf32, #tpu.memory_space<vmem>>, %arg8: memref<8x4xf32, #tpu.memory_space<vmem>>) attributes {dimension_semantics = [#tpu.dimension_semantics<parallel>], iteration_bounds = array<i64: 1>, scalar_prefetch = 0 : i64, scratch_operands = 0 : i64, tpu.core_type = #tpu.core_type<tc>, window_params = [{transform_indices = @transform_0, window_bounds = array<i64: 8, 16>}, {pipeline_mode = #tpu.pipeline_mode<synchronous>, transform_indices = @transform_1, window_bounds = array<i64: 16, 128>}, {pipeline_mode = #tpu.pipeline_mode<synchronous>, transform_indices = @transform_2, window_bounds = array<i64: 1, 128>}, {pipeline_mode = #tpu.pipeline_mode<synchronous>, transform_indices = @transform_3, window_bounds = array<i64: 128, 128>}, {pipeline_mode = #tpu.pipeline_mode<synchronous>, transform_indices = @transform_4, window_bounds = array<i64: 1, 128>}, {pipeline_mode = #tpu.pipeline_mode<synchronous>, transform_indices = @transform_5, window_bounds = array<i64: 128, 4>}, {pipeline_mode = #tpu.pipeline_mode<synchronous>, transform_indices = @transform_6, window_bounds = array<i64: 1, 4>}, {transform_indices = @transform_7, window_bounds = array<i64: 8, 4>}]} {
    %c0 = arith.constant 0 : index
    %c0_0 = arith.constant 0 : index
    %0 = vector.load %arg1[%c0, %c0_0] : memref<8x16xf32, #tpu.memory_space<vmem>>, vector<8x16xf32>
    %1 = arith.truncf %0 : vector<8x16xf32> to vector<8x16xbf16>
    %c0_1 = arith.constant 0 : index
    %c0_2 = arith.constant 0 : index
    %2 = vector.load %arg2[%c0_1, %c0_2] : memref<16x128xbf16, #tpu.memory_space<vmem>>, vector<16x128xbf16>
    %cst = arith.constant dense<0.000000e+00> : vector<8x128xf32>
    %3 = tpu.matmul %1, %2, %cst {dimension_numbers = #tpu.dot_dimension_numbers<[1], [0], [0], [1], [0, 0, 1, 1], [], []>} : vector<8x16xbf16>, vector<16x128xbf16>, vector<8x128xf32> -> vector<8x128xf32>
    %c0_3 = arith.constant 0 : index
    %c0_4 = arith.constant 0 : index
    %4 = vector.load %arg3[%c0_3, %c0_4] : memref<1x128xf32, #tpu.memory_space<vmem>>, vector<1x128xf32>
    %5 = vector.broadcast %4 : vector<1x128xf32> to vector<8x128xf32>
    %6 = arith.addf %3, %5 : vector<8x128xf32>
    %cst_5 = arith.constant 0.000000e+00 : f32
    %7 = vector.broadcast %cst_5 : f32 to vector<8x128xf32>
    %8 = arith.maximumf %6, %7 : vector<8x128xf32>
    %9 = arith.truncf %8 : vector<8x128xf32> to vector<8x128xbf16>
    %c0_6 = arith.constant 0 : index
    %c0_7 = arith.constant 0 : index
    %10 = vector.load %arg4[%c0_6, %c0_7] : memref<128x128xbf16, #tpu.memory_space<vmem>>, vector<128x128xbf16>
    %cst_8 = arith.constant dense<0.000000e+00> : vector<8x128xf32>
    %11 = tpu.matmul %9, %10, %cst_8 {dimension_numbers = #tpu.dot_dimension_numbers<[1], [0], [0], [1], [0, 0, 1, 1], [], []>} : vector<8x128xbf16>, vector<128x128xbf16>, vector<8x128xf32> -> vector<8x128xf32>
    %c0_9 = arith.constant 0 : index
    %c0_10 = arith.constant 0 : index
    %12 = vector.load %arg5[%c0_9, %c0_10] : memref<1x128xf32, #tpu.memory_space<vmem>>, vector<1x128xf32>
    %13 = vector.broadcast %12 : vector<1x128xf32> to vector<8x128xf32>
    %14 = arith.addf %11, %13 : vector<8x128xf32>
    %cst_11 = arith.constant 0.000000e+00 : f32
    %15 = vector.broadcast %cst_11 : f32 to vector<8x128xf32>
    %16 = arith.maximumf %14, %15 : vector<8x128xf32>
    %17 = arith.truncf %16 : vector<8x128xf32> to vector<8x128xbf16>
    %c0_12 = arith.constant 0 : index
    %c0_13 = arith.constant 0 : index
    %18 = vector.load %arg6[%c0_12, %c0_13] : memref<128x4xbf16, #tpu.memory_space<vmem>>, vector<128x4xbf16>
    %cst_14 = arith.constant dense<0.000000e+00> : vector<8x4xf32>
    %19 = tpu.matmul %17, %18, %cst_14 {dimension_numbers = #tpu.dot_dimension_numbers<[1], [0], [0], [1], [0, 0, 1, 1], [], []>} : vector<8x128xbf16>, vector<128x4xbf16>, vector<8x4xf32> -> vector<8x4xf32>
    %c0_15 = arith.constant 0 : index
    %c0_16 = arith.constant 0 : index
    %20 = vector.load %arg7[%c0_15, %c0_16] : memref<1x4xf32, #tpu.memory_space<vmem>>, vector<1x4xf32>
    %21 = vector.broadcast %20 : vector<1x4xf32> to vector<8x4xf32>
    %22 = arith.addf %19, %21 : vector<8x4xf32>
    %c0_17 = arith.constant 0 : index
    %c0_18 = arith.constant 0 : index
    %23 = vector.load %arg8[%c0_17, %c0_18] : memref<8x4xf32, #tpu.memory_space<vmem>>, vector<8x4xf32>
    tpu.vector_store %arg8[%c0_17, %c0_18], %22 {strides = array<i32>} : memref<8x4xf32, #tpu.memory_space<vmem>>, vector<8x4xf32>,
    return
  }
  func.func @transform_0(%arg0: i32) -> (i32, i32) {
    %c0_i32 = arith.constant 0 : i32
    %c0_i32_0 = arith.constant 0 : i32
    return %arg0, %c0_i32 : i32, i32
  }
  func.func @transform_1(%arg0: i32) -> (i32, i32) {
    %c0_i32 = arith.constant 0 : i32
    %c0_i32_0 = arith.constant 0 : i32
    %c0_i32_1 = arith.constant 0 : i32
    return %c0_i32, %c0_i32_0 : i32, i32
  }
  func.func @transform_2(%arg0: i32) -> (i32, i32) {
    %c0_i32 = arith.constant 0 : i32
    %c0_i32_0 = arith.constant 0 : i32
    %c0_i32_1 = arith.constant 0 : i32
    return %c0_i32, %c0_i32_0 : i32, i32
  }
  func.func @transform_3(%arg0: i32) -> (i32, i32) {
    %c0_i32 = arith.constant 0 : i32
    %c0_i32_0 = arith.constant 0 : i32
    %c0_i32_1 = arith.constant 0 : i32
    return %c0_i32, %c0_i32_0 : i32, i32
  }
  func.func @transform_4(%arg0: i32) -> (i32, i32) {
    %c0_i32 = arith.constant 0 : i32
    %c0_i32_0 = arith.constant 0 : i32
    %c0_i32_1 = arith.constant 0 : i32
    return %c0_i32, %c0_i32_0 : i32, i32
  }
  func.func @transform_5(%arg0: i32) -> (i32, i32) {
    %c0_i32 = arith.constant 0 : i32
    %c0_i32_0 = arith.constant 0 : i32
    %c0_i32_1 = arith.constant 0 : i32
    return %c0_i32, %c0_i32_0 : i32, i32
  }
  func.func @transform_6(%arg0: i32) -> (i32, i32) {
    %c0_i32 = arith.constant 0 : i32
    %c0_i32_0 = arith.constant 0 : i32
    %c0_i32_1 = arith.constant 0 : i32
    return %c0_i32, %c0_i32_0 : i32, i32
  }
  func.func @transform_7(%arg0: i32) -> (i32, i32) {
    %c0_i32 = arith.constant 0 : i32
    %c0_i32_0 = arith.constant 0 : i32
    return %arg0, %c0_i32 : i32, i32
  }
}

</mosaic_0001>

<bundles_post_ra>
// kernel: dqn_forward.1
= control target key start
LH: loop header
LB: loop body
LE: loop exit
PB: predicated region body
PF: predicated region fallthrough
CT: control target
= control target key end

     0   :  { %12 = vsyncpa [#allocation3], 0  ;;  %s634_s0 = inlined_call_operand.vmem [shape: f32[8,16], index: 0, kind: input, shape index: {}]   ;;  %s635_s1 = inlined_call_operand.hbm [shape: bf16[16,128], index: 1, kind: input, shape index: {}]   ;;  %s636_s2 = inlined_call_operand.vmem [shape: f32[1,128], index: 2, kind: input, shape index: {}]   ;;  %s637_s3 = inlined_call_operand.vmem [shape: bf16[128,128], index: 3, kind: input, shape index: {}]   ;;  %s638_s4 = inlined_call_operand.vmem [shape: f32[1,128], index: 4, kind: input, shape index: {}]   ;;  %s639_s5 = inlined_call_operand.vmem [shape: bf16[128,4], index: 5, kind: input, shape index: {}]   ;;  %s640_s6 = inlined_call_operand.hbm [shape: f32[1,4], index: 6, kind: input, shape index: {}]   ;;  %s641_s7 = inlined_call_operand.vmem [shape: f32[8,4], index: 7, kind: output, shape index: {}]  }
   0x1   :  { %13 = vsyncpa [#allocation5], 0  ;;  %s502_s24 = smov [#allocation2]  }
   0x2   :  { %s21_s25 = sshll.u32 %s502_s24, 4  ;;  %s22_s25 = int_to_ptr.vmem [resolvable:$true] %s21_s25 }
   0x3   :  { %s466_s26 = scalar_lea.vmem %s22_s25, 128  ;;  %p471_p1 = scmp.lt.s32.totalorder %s22_s25, %s22_s25 }
   0x4   :  { %p467_p0 = scmp.ne.s32.totalorder %s22_s25, %s466_s26  ;;  %p472_p2 = scmp.lt.s32.totalorder %s466_s26, %s466_s26 }
   0x6   :  { %p473_p3 = por %p472_p2, %p471_p1 }
   0x8   :  { %p474_p4 = pnand %p473_p3, %p467_p0 }
   0xa   :  { %477 = shalt.err (!%p474_p4)
}
   0xb   :  { %s503_s27 = smov 64   ;;  %s504_s28 = smov 4  }
   0xc   :  { %27 = dma.hbm_to_vmem [thread:$0]  %s635_s1, 128, %s22_s25, [#allocation3], %s503_s27, %s503_s27, %s504_s28  }
   0xd   :  { %s505_s8 = smov [#allocation4]  }
   0xe   :  { %s42_s9 = sshll.u32 %s505_s8, 4  ;;  %s43_s9 = int_to_ptr.vmem [resolvable:$true] %s42_s9 }
   0xf   :  { %s486_s10 = scalar_lea.vmem %s43_s9, 16  ;;  %s490_s11 = scalar_lea.vmem %s43_s9, 32 }
  0x10   :  { %p487_p5 = scmp.ne.s32.totalorder %s43_s9, %s486_s10  ;;  %p491_p6 = scmp.lt.s32.totalorder %s43_s9, %s43_s9 }
  0x11   :  { %p492_p7 = scmp.lt.s32.totalorder %s490_s11, %s486_s10 }
  0x13   :  { %p493_p8 = por %p492_p7, %p491_p6 }
  0x15   :  { %p494_p9 = pnand %p493_p8, %p487_p5 }
  0x17   :  { %497 = shalt.err (!%p494_p9)
}
  0x18   :  { %45 = dma.hbm_to_vmem [thread:$0]  %s640_s6, 16, %s43_s9, [#allocation5]  }
  0x19   :  { %498 = dma.done.wait [#allocation3], 128  }
  0x1a   :  { %499 = vsyncadd [#allocation3], 4294967168 }
  0x1b   :  { %500 = dma.done.wait [#allocation5], 16  }
  0x1c   :  { %501 = vsyncadd [#allocation5], 4294967280  ;;  %v506_v0 = vmov 0.0   ;;  %vm507_vm0 = vmmov 0   ;;  %v441_v1 = vld [vmem:[#allocation2] sm:$0xff]   ;;  %vm70_vm1 = vcmask 130048  }
  0x1d   :  { %389 = vmatprep.subr.bf16.mxu0 %v506_v0  ;;  %391 = vmatprep.mubr.msk.bf16.mxu0 %vm507_vm0, %v506_v0  ;;  %v53_v2 = vld [vmem:[%s634_s0] sm:$0xff]  ;;  %v442_v4 = vld [vmem:[%s637_s3 + $0x38] sm:$0xff]   ;;  %v443_v5 = vld [vmem:[%s637_s3 + $0x30] sm:$0xff]   ;;  %vm340_vm2 = vcmask 31744  }
  0x1e   :  { %395 = vmatprep.subr.bf16.mxu1 %v506_v0  ;;  %411 = vmatprep.mubr.msk.bf16.mxu1 %vm507_vm0, %v506_v0  ;;  %v54_v3 = vpack.c.bf16 %v53_v2, %v53_v2  ;;  %v444_v6 = vld [vmem:[%s637_s3 + $0x28] sm:$0xff]   ;;  %v445_v7 = vld [vmem:[%s637_s3 + $0x20] sm:$0xff]   ;;  %v446_v8 = vld [vmem:[%s637_s3 + $0x18] sm:$0xff]  }
  0x1f   :  { %390 = vmatpush3.bf16.msra.mxu0 %v441_v1  ;;  %396 = vmatpush3.bf16.msra.mxu1 %v442_v4  ;;  %v447_v9 = vld [vmem:[%s637_s3 + $0x10] sm:$0xff]   ;;  %v448_v10 = vld [vmem:[%s637_s3 + $0x8] sm:$0xff]   ;;  %v449_v11 = vld [vmem:[%s637_s3] sm:$0xff]  }
  0x20   :  { %415 = vmatprep.subr.bf16.mxu0 %v506_v0  ;;  %397 = vmatprep.subr.bf16.mxu1 %v506_v0  ;;  %v450_v12 = vld [vmem:[%s639_s5 + $0x38] sm:$0xff]   ;;  %v451_v13 = vld [vmem:[%s639_s5 + $0x30] sm:$0xff]   ;;  %v452_v14 = vld [vmem:[%s639_s5 + $0x28] sm:$0xff]  }
  0x21   :  { %v453_v15 = vld [vmem:[%s639_s5 + $0x20] sm:$0xff]   ;;  %v454_v16 = vld [vmem:[%s639_s5 + $0x18] sm:$0xff]   ;;  %v455_v17 = vld [vmem:[%s639_s5 + $0x10] sm:$0xff]  }
  0x22   :  { %392 = vmatmul.mubr.msk.bf16.vlgmr.msra.gmra.mxu0 %vm70_vm1, %v54_v3  ;;  %v348_v18 = vld [vmem:[%s636_s2] ss:$0 sm:$0xff]  ;;  %v456_v26 = vld [vmem:[%s639_s5 + $0x8] sm:$0xff]  }
  0x23   :  { %431 = vmatprep.mubr.msk.bf16.mxu0 %vm507_vm0, %v506_v0  ;;  %398 = vmatpush3.bf16.msra.mxu1 %v443_v5  ;;  %v457_v27 = vld [vmem:[%s639_s5] sm:$0xff]   ;;  %v360_v36 = vld [vmem:[#allocation4] ss:$0 sm:$0xff] }
  0x24   :  { %399 = vmatprep.subr.bf16.mxu1 %v506_v0  ;;  %416 = vmatpush3.bf16.msra.mxu0 %v450_v12  ;;  %v351_v28 = vld [vmem:[%s638_s4] ss:$0 sm:$0xff] }
  0x25   :  { %417 = vmatprep.subr.bf16.mxu0 %v506_v0 }
  0x27   :  { %400 = vmatpush3.bf16.msra.mxu1 %v444_v6 }
  0x28   :  { %401 = vmatprep.subr.bf16.mxu1 %v506_v0  ;;  %418 = vmatpush3.bf16.msra.mxu0 %v451_v13 }
  0x29   :  { %419 = vmatprep.subr.bf16.mxu0 %v506_v0 }
  0x2b   :  { %402 = vmatpush3.bf16.msra.mxu1 %v445_v7 }
  0x2c   :  { %403 = vmatprep.subr.bf16.mxu1 %v506_v0  ;;  %420 = vmatpush3.bf16.msra.mxu0 %v452_v14 }
  0x2d   :  { %421 = vmatprep.subr.bf16.mxu0 %v506_v0 }
  0x2f   :  { %404 = vmatpush3.bf16.msra.mxu1 %v446_v8 }
  0x30   :  { %405 = vmatprep.subr.bf16.mxu1 %v506_v0  ;;  %422 = vmatpush3.bf16.msra.mxu0 %v453_v15 }
  0x31   :  { %423 = vmatprep.subr.bf16.mxu0 %v506_v0 }
  0x33   :  { %406 = vmatpush3.bf16.msra.mxu1 %v447_v9 }
  0x34   :  { %407 = vmatprep.subr.bf16.mxu1 %v506_v0  ;;  %424 = vmatpush3.bf16.msra.mxu0 %v454_v16 }
  0x35   :  { %425 = vmatprep.subr.bf16.mxu0 %v506_v0 }
  0x37   :  { %408 = vmatpush3.bf16.msra.mxu1 %v448_v10 }
  0x38   :  { %409 = vmatprep.subr.bf16.mxu1 %v506_v0  ;;  %426 = vmatpush3.bf16.msra.mxu0 %v455_v17 }
  0x39   :  { %427 = vmatprep.subr.bf16.mxu0 %v506_v0 }
  0x3b   :  { %410 = vmatpush3.bf16.msra.mxu1 %v449_v11 }
  0x3c   :  { %428 = vmatpush3.bf16.msra.mxu0 %v456_v26 }
  0x3d   :  { %429 = vmatprep.subr.bf16.mxu0 %v506_v0 }
  0x40   :  { %430 = vmatpush3.bf16.msra.mxu0 %v457_v27 }
  0xe2   :  { %v108_v19 = vpop.f32.mrf.mxu0 }
  0xe3   :  { %v109_v20 = vadd.f32 %v348_v18, %v108_v19 }
  0xe4   :  { %v393_v21 = vpop.f32.mrf.mxu0 }
  0xe5   :  { %v114_v22 = vmax.f32 %v109_v20, 0.0 }
  0xe6   :  { %v111_v23 = vpop.f32.mrf.mxu0 }
  0xe7   :  { %v115_v24 = vpack.c.bf16 %v114_v22, %v114_v22 }
  0xe8   :  { %v394_v25 = vpop.f32.mrf.mxu0 }
  0xe9   :  { %412 = vmatmul.mubr.bf16.vlgmr.msra.gmra.mxu1 %v115_v24 }
 0x1a9   :  { %v221_v29 = vpop.f32.mrf.mxu1 }
 0x1aa   :  { %v222_v30 = vadd.f32 %v351_v28, %v221_v29 }
 0x1ab   :  { %v413_v31 = vpop.f32.mrf.mxu1 }
 0x1ac   :  { %v227_v32 = vmax.f32 %v222_v30, 0.0 }
 0x1ad   :  { %v224_v33 = vpop.f32.mrf.mxu1 }
 0x1ae   :  { %v228_v34 = vpack.c.bf16 %v227_v32, %v227_v32 }
 0x1af   :  { %v414_v35 = vpop.f32.mrf.mxu1 }
 0x1b0   :  { %432 = vmatmul.mubr.bf16.vlgmr.msra.gmra.mxu0 %v228_v34 }
 0x270   :  { %v334_v37 = vpop.f32.mrf.mxu0 }
 0x271   :  { %v335_v38 = vadd.f32 %v360_v36, %v334_v37 }
 0x272   :  { %v433_v39 = vpop.f32.mrf.mxu0 }
 0x273   :  { %341 = vst.msk [vmem:[%s641_s7] sm:$0xff] %vm340_vm2, %v335_v38 }
 0x274   :  { %v337_v40 = vpop.f32.mrf.mxu0 }
 0x276   :  { %v434_v41 = vpop.f32.mrf.mxu0 }
 0x277   :  { %346 = vsyncpa [#allocation3], 1 }
 0x278   :  { %347 = vsyncpa [#allocation5], 1 }

</bundles_post_ra>
